<compile_context>
chip_gen: v6e
topology: v6e:2x2x1
jax: 0.10.0
libtpu: 0.0.40
codegen_flags: <defaults>
</compile_context>

<pallas_src>
import math

import jax
import jax.numpy as jnp
from jax.experimental import pallas as pl
from jax.experimental.pallas import tpu as pltpu


def _round_up(x, m):
    return -(-x // m) * m


def _vmem_budget():
    """Generation-aware scoped-VMEM limit and tile budget (bytes)."""
    try:
        cap = int(getattr(pltpu.get_tpu_info(), "vmem_capacity_bytes",
                          64 * 1024 * 1024))
    except Exception:  # no TPU info available -> conservative default
        cap = 64 * 1024 * 1024
    if cap <= 64 * 1024 * 1024:       # v7x-class: 64 MiB per TensorCore
        limit = cap // 2              # ~32 MiB scoped limit
    else:                             # v5e/v6e: 128 MiB physical
        limit = (cap * 5) // 8        # ~80 MiB scoped limit
    budget = (limit * 7) // 10        # tile budget with headroom under limit
    return limit, budget


def _choose_fill(d_pad, b_min, target_rows):
    """Sublane-fill factor r for the metadata reshape (B, D) -> (B*r, D/r)."""
    r = 1
    while (b_min * r < target_rows
           and d_pad % (2 * r * 128) == 0
           and r < 16):
        r *= 2
    return r


def _choose_tiling(d_eff, *, bytes_per_col, budget):
    """Largest lane-aligned tile width dividing d_eff that fits the budget.

    Returns (d_tile, n_par, steps).  Prefers an even tile count so the leading
    grid axis can be split "parallel" across v7x's two TensorCores (a size-1
    or serialized axis is harmless on v5e/v6e).
    """
    n_blocks = d_eff // 128
    best_any = None       # (width, n_tiles): largest fitting width overall
    best_even = None      # largest fitting width with an even tile count
    for t in range(1, n_blocks + 1):
        if n_blocks % t:
            continue
        width = (n_blocks // t) * 128
        if width * bytes_per_col > budget:
            continue
        if best_any is None:
            best_any = (width, t)
        if best_even is None and t % 2 == 0:
            best_even = (width, t)
        if best_any is not None and best_even is not None:
            break
    if best_any is None:              # even a 128-wide tile busts the budget
        best_any = (128, n_blocks)
        if n_blocks % 2 == 0:
            best_even = (128, n_blocks)
    if best_even is not None:
        width, t = best_even
        return width, 2, t // 2
    width, t = best_any
    return width, 1, t


def _sse_kernel(ftl_ref, ftu_ref, fsl_ref, fsu_ref,
                sse_l_ref, sse_u_ref,
                acc_l_ref, acc_u_ref):
    """Streaming squared-error accumulation with per-chunk row-SSE partials.

    Hot loop is pure VPU (cast/sub/mul/add) on sublane-filled tiles with f32
    VMEM accumulators; a single XLU cross-lane reduce per chunk writes the
    per-row partial sums.
    """
    k = pl.program_id(1)

    @pl.when(k == 0)
    def _init():
        acc_l_ref[...] = jnp.zeros_like(acc_l_ref)
        acc_u_ref[...] = jnp.zeros_like(acc_u_ref)

    dl = ftl_ref[...].astype(jnp.float32) - fsl_ref[...].astype(jnp.float32)
    du = ftu_ref[...].astype(jnp.float32) - fsu_ref[...].astype(jnp.float32)
    acc_l_ref[...] += dl * dl
    acc_u_ref[...] += du * du

    @pl.when(k == pl.num_programs(1) - 1)
    def _finalize():
        sse_l_ref[0, :, :] = jnp.sum(acc_l_ref[...], axis=1, keepdims=True)
        sse_u_ref[0, :, :] = jnp.sum(acc_u_ref[...], axis=1, keepdims=True)


def semi_supervised_transfer_loss(out_target_labeled,
                                  features_target_labeled,
                                  features_target_unlabeled,
                                  out_target_unlabeled,
                                  out_source_labeled,
                                  features_source_labeled,
                                  features_source_unlabeled,
                                  out_source_unlabeled,
                                  y_true,
                                  *,
                                  lambda_cons=1.0,
                                  lambda_rep=1.0,
                                  epsilon_cons=0.7,
                                  epsilon_rep=0.5):
    del lambda_rep, epsilon_rep  # ARC branch is provably dead (see header).
    del out_target_unlabeled     # only used by the dead ARC branch.

    b_l, _ = out_target_labeled.shape
    b_u = out_source_unlabeled.shape[0]

    # ---- classification loss: NLL on probabilities (tiny; plain JAX) -------
    picked = jnp.take_along_axis(out_target_labeled.astype(jnp.float32),
                                 y_true.astype(jnp.int32)[:, None], axis=1)
    cls_loss = -jnp.mean(jnp.log(picked))

    if not lambda_cons > 0:
        return cls_loss

    eps_cons = float(epsilon_cons) * math.log(2.0)

    # ---- flatten NCHW -> (B, D); zero-pad D to a 128 multiple if needed ----
    flat = lambda f: f.reshape(f.shape[0], -1)
    ftl, ftu = flat(features_target_labeled), flat(features_target_unlabeled)
    fsl, fsu = flat(features_source_labeled), flat(features_source_unlabeled)
    d = ftl.shape[1]
    assert ftu.shape[1] == d and fsl.shape[1] == d and fsu.shape[1] == d

    d_pad = _round_up(d, 128)
    if d_pad != d:
        # Zero-pad is loss-neutral for squared differences (rare fallback).
        padder = lambda f: jnp.pad(f, ((0, 0), (0, d_pad - d)))
        ftl, ftu, fsl, fsu = padder(ftl), padder(ftu), padder(fsl), padder(fsu)

    feat_bytes = jnp.dtype(ftl.dtype).itemsize
    sub_in = max(8, 32 // feat_bytes)        # sublane rows: 8 f32, 16 bf16

    # ---- sublane fill: (B, D) -> (B*r, D/r), metadata-only reshape ---------
    r = _choose_fill(d_pad, max(1, min(b_l, b_u)), sub_in)
    d_eff = d_pad // r
    rows_l, rows_u = b_l * r, b_u * r
    refill = lambda f, rows: f.reshape(rows, d_eff)
    ftl, fsl = refill(ftl, rows_l), refill(fsl, rows_l)
    ftu, fsu = refill(ftu, rows_u), refill(fsu, rows_u)

    # ---- tile width from a generation-aware, padding-aware VMEM budget -----
    vmem_limit, budget = _vmem_budget()
    in_rows = _round_up(rows_l, sub_in) + _round_up(rows_u, sub_in)
    acc_rows = _round_up(rows_l, 8) + _round_up(rows_u, 8)
    # 2 tensors (target+source) per row-set x 2 pipeline buffers, plus the
    # single-buffered f32 accumulators.
    bytes_per_col = 2 * 2 * in_rows * feat_bytes + 4 * acc_rows
    d_tile, n_par, steps = _choose_tiling(d_eff, bytes_per_col=bytes_per_col,
                                          budget=budget)

    feat_spec = lambda rows: pl.BlockSpec(
        (rows, d_tile), lambda cpar, k: (0, cpar * steps + k))
    out_spec = lambda rows: pl.BlockSpec(
        (1, rows, 1), lambda cpar, k: (cpar, 0, 0))

    cost = pl.CostEstimate(
        flops=int(3 * (rows_l + rows_u) * d_eff),
        transcendentals=0,
        bytes_accessed=int(2 * (rows_l + rows_u) * d_eff * feat_bytes),
    )

    part_l, part_u = pl.pallas_call(
        _sse_kernel,
        out_shape=(jax.ShapeDtypeStruct((n_par, rows_l, 1), jnp.float32),
                   jax.ShapeDtypeStruct((n_par, rows_u, 1), jnp.float32)),
        grid=(n_par, steps),
        in_specs=[
            feat_spec(rows_l),   # features_target_labeled   (native dtype)
            feat_spec(rows_u),   # features_target_unlabeled
            feat_spec(rows_l),   # features_source_labeled
            feat_spec(rows_u),   # features_source_unlabeled
        ],
        out_specs=(out_spec(rows_l), out_spec(rows_u)),
        scratch_shapes=[
            pltpu.VMEM((rows_l, d_tile), jnp.float32),   # labeled sq-err acc
            pltpu.VMEM((rows_u, d_tile), jnp.float32),   # unlabeled sq-err acc
        ],
        compiler_params=pltpu.CompilerParams(
            dimension_semantics=("parallel", "arbitrary"),
            vmem_limit_bytes=int(vmem_limit)),
        cost_estimate=cost,
    )(ftl, ftu, fsl, fsu)

    # ---- combine partials: (n_par, B*r, 1) -> per-original-row SSE ---------
    sse_l = part_l.sum(axis=0)[:, 0].reshape(b_l, r).sum(axis=1)   # (b_l,)
    sse_u = part_u.sum(axis=0)[:, 0].reshape(b_u, r).sum(axis=1)   # (b_u,)

    # ---- AKC: entropy mask over source outputs (tiny; plain JAX) -----------
    def ent_mask(p):
        p = p.astype(jnp.float32)
        # Matches the reference: p*log(p) with no zero guard (an exact-zero
        # probability gives NaN entropy and the row is excluded).
        return -jnp.sum(p * jnp.log(p), axis=1) <= jnp.float32(eps_cons)

    mask_l = ent_mask(out_source_labeled)
    mask_u = ent_mask(out_source_unlabeled)
    masked_sum = (jnp.sum(jnp.where(mask_l, sse_l, 0.0))
                  + jnp.sum(jnp.where(mask_u, sse_u, 0.0)))
    count = (jnp.sum(mask_l) + jnp.sum(mask_u)).astype(jnp.float32)
    # mean over selected elements (count * D); 0/0 -> NaN matches torch's
    # mean over an empty selection.
    akc = masked_sum / (count * jnp.float32(d))

    return cls_loss + jnp.float32(lambda_cons) * akc


def _reference_loss(out_tl, ftl, ftu, otu, osl, fsl, fsu, osu, y_true,
                    lambda_cons=1.0, epsilon_cons=0.7):
    eps_cons = epsilon_cons * math.log(2.0)
    b, c = out_tl.shape
    cls = -jnp.mean(jnp.log(out_tl)[jnp.arange(b), y_true])
    out_src = jnp.concatenate([osl, osu], axis=0)
    ent = -jnp.sum(out_src * jnp.log(out_src), axis=1)
    mask = (ent <= eps_cons).astype(jnp.float32)
    flat = lambda f: f.reshape(f.shape[0], -1)
    ft = jnp.concatenate([flat(ftl), flat(ftu)], axis=0)
    fs = jnp.concatenate([flat(fsl), flat(fsu)], axis=0)
    sq = (ft - fs) ** 2
    akc = jnp.sum(mask[:, None] * sq) / (jnp.sum(mask) * sq.shape[1])
    return cls + lambda_cons * akc


if __name__ == "__main__":
    key = jax.random.PRNGKey(0)
    ks = jax.random.split(key, 10)

    B_L, B_U = 4, 4          # labeled / unlabeled batch
    C_CLS = 8                # number of classes
    C_F, H, W = 16, 16, 16   # conv feature maps, NCHW -> D = 4096

    # Peaked probability outputs (low entropy so the AKC mask is non-empty).
    mk_probs = lambda k, n: jax.nn.softmax(
        10.0 * jax.random.normal(k, (n, C_CLS), dtype=jnp.float32), axis=-1)

    out_target_labeled = mk_probs(ks[0], B_L)
    out_target_unlabeled = mk_probs(ks[1], B_U)
    out_source_labeled = mk_probs(ks[2], B_L)
    out_source_unlabeled = mk_probs(ks[3], B_U)

    features_target_labeled = jax.random.normal(ks[4], (B_L, C_F, H, W), jnp.float32)
    features_target_unlabeled = jax.random.normal(ks[5], (B_U, C_F, H, W), jnp.float32)
    features_source_labeled = jax.random.normal(ks[6], (B_L, C_F, H, W), jnp.float32)
    features_source_unlabeled = jax.random.normal(ks[7], (B_U, C_F, H, W), jnp.float32)

    y_true = jax.random.randint(ks[8], (B_L,), 0, C_CLS)

    loss = semi_supervised_transfer_loss(
        out_target_labeled, features_target_labeled, features_target_unlabeled,
        out_target_unlabeled, out_source_labeled, features_source_labeled,
        features_source_unlabeled, out_source_unlabeled, y_true,
        lambda_cons=1.0, lambda_rep=1.0, epsilon_cons=0.7, epsilon_rep=0.5)
    loss = jax.block_until_ready(loss)

    ref = _reference_loss(
        out_target_labeled, features_target_labeled, features_target_unlabeled,
        out_target_unlabeled, out_source_labeled, features_source_labeled,
        features_source_unlabeled, out_source_unlabeled, y_true)

    assert jnp.allclose(loss, ref, rtol=1e-4, atol=1e-5), (loss, ref)
    print("KERNEL_OK")
</pallas_src>

<mosaic_0001>
module attributes {stable_mosaic.version = 11 : i64} {
  func.func @_sse_kernel(%arg0: i32, %arg1: i32, %arg2: memref<8x1024xf32, #tpu.memory_space<vmem>>, %arg3: memref<8x1024xf32, #tpu.memory_space<vmem>>, %arg4: memref<8x1024xf32, #tpu.memory_space<vmem>>, %arg5: memref<8x1024xf32, #tpu.memory_space<vmem>>, %arg6: memref<1x8x1xf32, #tpu.memory_space<vmem>>, %arg7: memref<1x8x1xf32, #tpu.memory_space<vmem>>, %arg8: memref<8x1024xf32, #tpu.memory_space<vmem>>, %arg9: memref<8x1024xf32, #tpu.memory_space<vmem>>) attributes {dimension_semantics = [#tpu.dimension_semantics<parallel>, #tpu.dimension_semantics<arbitrary>], iteration_bounds = array<i64: 2, 1>, scalar_prefetch = 0 : i64, scratch_operands = 2 : i64, tpu.core_type = #tpu.core_type<tc>, window_params = [{transform_indices = @transform_0, window_bounds = array<i64: 8, 1024>}, {transform_indices = @transform_1, window_bounds = array<i64: 8, 1024>}, {transform_indices = @transform_2, window_bounds = array<i64: 8, 1024>}, {transform_indices = @transform_3, window_bounds = array<i64: 8, 1024>}, {transform_indices = @transform_4, window_bounds = array<i64: 1, 8, 1>}, {transform_indices = @transform_5, window_bounds = array<i64: 1, 8, 1>}]} {
    %c0_i32 = arith.constant 0 : i32
    %0 = arith.cmpi eq, %arg1, %c0_i32 : i32
    %1 = arith.extui %0 : i1 to i32
    %c0_i32_0 = arith.constant 0 : i32
    %2 = arith.cmpi ne, %1, %c0_i32_0 : i32
    scf.if %2 {
      %cst = arith.constant 0.000000e+00 : f32
      %20 = vector.broadcast %cst : f32 to vector<8x1024xf32>
      %c0_18 = arith.constant 0 : index
      %c0_19 = arith.constant 0 : index
      %21 = vector.load %arg8[%c0_18, %c0_19] : memref<8x1024xf32, #tpu.memory_space<vmem>>, vector<8x1024xf32>
      tpu.vector_store %arg8[%c0_18, %c0_19], %20 {strides = array<i32>} : memref<8x1024xf32, #tpu.memory_space<vmem>>, vector<8x1024xf32>,
      %cst_20 = arith.constant 0.000000e+00 : f32
      %22 = vector.broadcast %cst_20 : f32 to vector<8x1024xf32>
      %c0_21 = arith.constant 0 : index
      %c0_22 = arith.constant 0 : index
      %23 = vector.load %arg9[%c0_21, %c0_22] : memref<8x1024xf32, #tpu.memory_space<vmem>>, vector<8x1024xf32>
      tpu.vector_store %arg9[%c0_21, %c0_22], %22 {strides = array<i32>} : memref<8x1024xf32, #tpu.memory_space<vmem>>, vector<8x1024xf32>,
    } else {
    }
    %c0 = arith.constant 0 : index
    %c0_1 = arith.constant 0 : index
    %3 = vector.load %arg2[%c0, %c0_1] : memref<8x1024xf32, #tpu.memory_space<vmem>>, vector<8x1024xf32>
    %c0_2 = arith.constant 0 : index
    %c0_3 = arith.constant 0 : index
    %4 = vector.load %arg4[%c0_2, %c0_3] : memref<8x1024xf32, #tpu.memory_space<vmem>>, vector<8x1024xf32>
    %5 = arith.subf %3, %4 : vector<8x1024xf32>
    %c0_4 = arith.constant 0 : index
    %c0_5 = arith.constant 0 : index
    %6 = vector.load %arg3[%c0_4, %c0_5] : memref<8x1024xf32, #tpu.memory_space<vmem>>, vector<8x1024xf32>
    %c0_6 = arith.constant 0 : index
    %c0_7 = arith.constant 0 : index
    %7 = vector.load %arg5[%c0_6, %c0_7] : memref<8x1024xf32, #tpu.memory_space<vmem>>, vector<8x1024xf32>
    %8 = arith.subf %6, %7 : vector<8x1024xf32>
    %c0_8 = arith.constant 0 : index
    %c0_9 = arith.constant 0 : index
    %9 = vector.load %arg8[%c0_8, %c0_9] : memref<8x1024xf32, #tpu.memory_space<vmem>>, vector<8x1024xf32>
    %10 = arith.mulf %5, %5 : vector<8x1024xf32>
    %11 = arith.addf %9, %10 : vector<8x1024xf32>
    %c0_10 = arith.constant 0 : index
    %c0_11 = arith.constant 0 : index
    %12 = vector.load %arg8[%c0_10, %c0_11] : memref<8x1024xf32, #tpu.memory_space<vmem>>, vector<8x1024xf32>
    tpu.vector_store %arg8[%c0_10, %c0_11], %11 {strides = array<i32>} : memref<8x1024xf32, #tpu.memory_space<vmem>>, vector<8x1024xf32>,
    %c0_12 = arith.constant 0 : index
    %c0_13 = arith.constant 0 : index
    %13 = vector.load %arg9[%c0_12, %c0_13] : memref<8x1024xf32, #tpu.memory_space<vmem>>, vector<8x1024xf32>
    %14 = arith.mulf %8, %8 : vector<8x1024xf32>
    %15 = arith.addf %13, %14 : vector<8x1024xf32>
    %c0_14 = arith.constant 0 : index
    %c0_15 = arith.constant 0 : index
    %16 = vector.load %arg9[%c0_14, %c0_15] : memref<8x1024xf32, #tpu.memory_space<vmem>>, vector<8x1024xf32>
    tpu.vector_store %arg9[%c0_14, %c0_15], %15 {strides = array<i32>} : memref<8x1024xf32, #tpu.memory_space<vmem>>, vector<8x1024xf32>,
    %c0_i32_16 = arith.constant 0 : i32
    %17 = arith.cmpi eq, %arg1, %c0_i32_16 : i32
    %18 = arith.extui %17 : i1 to i32
    %c0_i32_17 = arith.constant 0 : i32
    %19 = arith.cmpi ne, %18, %c0_i32_17 : i32
    scf.if %19 {
      %c0_18 = arith.constant 0 : index
      %c0_19 = arith.constant 0 : index
      %20 = vector.load %arg8[%c0_18, %c0_19] : memref<8x1024xf32, #tpu.memory_space<vmem>>, vector<8x1024xf32>
      %cst = arith.constant dense<0.000000e+00> : vector<8xf32>
      %21 = vector.multi_reduction <add>, %20, %cst [1] : vector<8x1024xf32> to vector<8xf32>
      %22 = vector.shape_cast %21 : vector<8xf32> to vector<8x1xf32>
      %c0_20 = arith.constant 0 : index
      %c0_21 = arith.constant 0 : index
      %c0_22 = arith.constant 0 : index
      %23 = vector.load %arg6[%c0_20, %c0_21, %c0_22] : memref<1x8x1xf32, #tpu.memory_space<vmem>>, vector<1x8x1xf32>
      %24 = vector.shape_cast %23 : vector<1x8x1xf32> to vector<8x1xf32>
      %25 = vector.shape_cast %22 : vector<8x1xf32> to vector<1x8x1xf32>
      tpu.vector_store %arg6[%c0_20, %c0_21, %c0_22], %25 {strides = array<i32>} : memref<1x8x1xf32, #tpu.memory_space<vmem>>, vector<1x8x1xf32>,
      %c0_23 = arith.constant 0 : index
      %c0_24 = arith.constant 0 : index
      %26 = vector.load %arg9[%c0_23, %c0_24] : memref<8x1024xf32, #tpu.memory_space<vmem>>, vector<8x1024xf32>
      %cst_25 = arith.constant dense<0.000000e+00> : vector<8xf32>
      %27 = vector.multi_reduction <add>, %26, %cst_25 [1] : vector<8x1024xf32> to vector<8xf32>
      %28 = vector.shape_cast %27 : vector<8xf32> to vector<8x1xf32>
      %c0_26 = arith.constant 0 : index
      %c0_27 = arith.constant 0 : index
      %c0_28 = arith.constant 0 : index
      %29 = vector.load %arg7[%c0_26, %c0_27, %c0_28] : memref<1x8x1xf32, #tpu.memory_space<vmem>>, vector<1x8x1xf32>
      %30 = vector.shape_cast %29 : vector<1x8x1xf32> to vector<8x1xf32>
      %31 = vector.shape_cast %28 : vector<8x1xf32> to vector<1x8x1xf32>
      tpu.vector_store %arg7[%c0_26, %c0_27, %c0_28], %31 {strides = array<i32>} : memref<1x8x1xf32, #tpu.memory_space<vmem>>, vector<1x8x1xf32>,
    } else {
    }
    return
  }
  func.func @transform_0(%arg0: i32, %arg1: i32) -> (i32, i32) {
    %c1_i32 = arith.constant 1 : i32
    %0 = arith.muli %arg0, %c1_i32 : i32
    %1 = arith.addi %0, %arg1 : i32
    %c0_i32 = arith.constant 0 : i32
    %c0_i32_0 = arith.constant 0 : i32
    return %c0_i32, %1 : i32, i32
  }
  func.func @transform_1(%arg0: i32, %arg1: i32) -> (i32, i32) {
    %c1_i32 = arith.constant 1 : i32
    %0 = arith.muli %arg0, %c1_i32 : i32
    %1 = arith.addi %0, %arg1 : i32
    %c0_i32 = arith.constant 0 : i32
    %c0_i32_0 = arith.constant 0 : i32
    return %c0_i32, %1 : i32, i32
  }
  func.func @transform_2(%arg0: i32, %arg1: i32) -> (i32, i32) {
    %c1_i32 = arith.constant 1 : i32
    %0 = arith.muli %arg0, %c1_i32 : i32
    %1 = arith.addi %0, %arg1 : i32
    %c0_i32 = arith.constant 0 : i32
    %c0_i32_0 = arith.constant 0 : i32
    return %c0_i32, %1 : i32, i32
  }
  func.func @transform_3(%arg0: i32, %arg1: i32) -> (i32, i32) {
    %c1_i32 = arith.constant 1 : i32
    %0 = arith.muli %arg0, %c1_i32 : i32
    %1 = arith.addi %0, %arg1 : i32
    %c0_i32 = arith.constant 0 : i32
    %c0_i32_0 = arith.constant 0 : i32
    return %c0_i32, %1 : i32, i32
  }
  func.func @transform_4(%arg0: i32, %arg1: i32) -> (i32, i32, i32) {
    %c0_i32 = arith.constant 0 : i32
    %c0_i32_0 = arith.constant 0 : i32
    %c0_i32_1 = arith.constant 0 : i32
    return %arg0, %c0_i32, %c0_i32_0 : i32, i32, i32
  }
  func.func @transform_5(%arg0: i32, %arg1: i32) -> (i32, i32, i32) {
    %c0_i32 = arith.constant 0 : i32
    %c0_i32_0 = arith.constant 0 : i32
    %c0_i32_1 = arith.constant 0 : i32
    return %arg0, %c0_i32, %c0_i32_0 : i32, i32, i32
  }
}

</mosaic_0001>

<bundles_post_ra>
// kernel: tpu_custom_call.1
= control target key start
LH: loop header
LB: loop body
LE: loop exit
PB: predicated region body
PF: predicated region fallthrough
CT: control target
= control target key end

     0   :  { %s1248_s0 = inlined_call_operand.hbm [shape: f32[8,2048], index: 0, kind: input, shape index: {}]   ;;  %s1249_s1 = inlined_call_operand.hbm [shape: f32[8,2048], index: 1, kind: input, shape index: {}]   ;;  %s1250_s2 = inlined_call_operand.hbm [shape: f32[8,2048], index: 2, kind: input, shape index: {}]   ;;  %s1251_s3 = inlined_call_operand.hbm [shape: f32[8,2048], index: 3, kind: input, shape index: {}]   ;;  %s1252_s4 = inlined_call_operand.vmem [shape: f32[2,8,1], index: 4, kind: output, shape index: {0}]   ;;  %s1253_s5 = inlined_call_operand.vmem [shape: f32[2,8,1], index: 5, kind: output, shape index: {1}]  }
   0x1   :  { %1255 = sst [smem:[#allocation14_spill]] %s1248_s0 }
   0x2   :  { %11 = vsyncpa [#allocation5], 0 }
   0x3   :  { %13 = vsyncpa [#allocation5 + $0x1], 0 }
   0x4   :  { %14 = vsyncpa [#allocation7], 0 }
   0x5   :  { %16 = vsyncpa [#allocation7 + $0x1], 0 }
   0x6   :  { %17 = vsyncpa [#allocation10], 0 }
   0x7   :  { %19 = vsyncpa [#allocation10 + $0x1], 0  ;;  %s1046_s18 = smov 0   ;;  %s1048_s19 = smov 0  }
   0x8   :  { %s1050_s20 = smov 0   ;;  %s1052_s21 = smov 0  }
   0x9   :  { %s1054_s22 = smov 0   ;;  %s1056_s23 = smov 0  }
   0xa LB: > { %s1254_s24 = sadd.s32 4294967295, %s1010_s23   ;;  %s37_s25 = sadd.s32 1, %s1006_s22  ;;  %s1010_s23 = sphi %s1056_s23, %s25_s23   ;;  %s1006_s22 = sphi %s1054_s22, %s1265_s22   ;;  %s1002_s21 = sphi %s1052_s21, %s1264_s21   ;;  %s998_s20 = sphi %s1050_s20, %s1263_s20   ;;  %s994_s19 = sphi %s1048_s19, %s1262_s19   ;;  %s990_s18 = sphi %s1046_s18, %s1261_s18  }
   0xb   : > { %p39_p0 = scmp.ge.s32.totalorder %s37_s25, 2  ;;  %s46_s26 = sadd.s32 1, %s998_s20 }
   0xc   : > { %p53_p1 = scmp.ne.s32.totalorder %s998_s20, %s994_s19  ;;  %p54_p2 = scmp.eq.s32.totalorder %s1010_s23, 0 }
   0xd   : > { %s1267_s25 = smov (%p39_p0, %s37_s25), 0  ;;  %p59_p4 = scmp.ne.s32.totalorder %s994_s19, %s990_s18 }
   0xe   : > { %p55_p3 = por %p54_p2, %p53_p1  ;;  %s43_s27 = ssub.s32 %s1006_s22, %s1267_s25 }
   0xf   : > { %p60_p5 = scmp.eq.s32.totalorder %s1254_s24, 0  ;;  %p44_p6 = scmp.eq.s32.totalorder %s43_s27, 0 }
  0x10   : > { %p791_p8 = scmp.lt.s32.totalorder %s1010_s23, 2  ;;  %s1096_s30 = sand.u32 1, %s998_s20  }
  0x11   : > { %p1087_p7 = por %p60_p5, %p59_p4  ;;  %s1099_s6 = sshll.u32 %s1006_s22, 10 }
  0x12   : > { %s1093_s29 = scalar_select %p44_p6, %s998_s20, %s46_s26  }
  0x13   : > { %s1102_s7 = sshll.u32 %s1096_s30, 6  ;;  %p1104_p9 = pnand %p791_p8, %p55_p3 }
  0x14   : > { %s239_s9 = sand.u32 1, %s1010_s23   ;;  %s250_s12 = scalar_lea.hbm %s1249_s1, %s1099_s6 }
  0x15   : > { %s243_s13 = scalar_lea.vmem [#allocation6], %s1102_s7  ;;  %p757_p10 = scmp.ge.s32.totalorder %s1010_s23, 1 }
  0x16   : > { %s252_s14 = sshll.u32 %s243_s13, 4  ;;  %s1115_s15 = scalar_lea.sflag [#allocation7], %s239_s9  ;;  %s253_s14 = int_to_ptr.vmem [resolvable:$true] %s252_s14 }
  0x17   : > { %p842_p11 = pneg %p1104_p9  ;;  %s853_s16 = scalar_lea.vmem %s253_s14, 1024 }
  0x18   : > { %p854_p12 = scmp.ne.s32.totalorder %s253_s14, %s853_s16  ;;  %s1012_s17 = smov [#allocation6]  }
  0x19   : > { %s858_s18 = sshll.u32 %s1012_s17, 4  ;;  %s859_s18 = int_to_ptr.vmem [resolvable:$false] %s858_s18 }
  0x1a   : > { %p856_p13 = pnand %p854_p12, %p842_p11  ;;  %s860_s26 = scalar_lea.vmem %s859_s18, 2048 }
  0x1b   : > { %p861_p1 = scmp.lt.s32.totalorder %s253_s14, %s859_s18  ;;  %p862_p2 = scmp.lt.s32.totalorder %s860_s26, %s853_s16 }
  0x1c   : > { %p857_p0 = pneg %p856_p13 }
  0x1d   : > { %p863_p3 = por %p862_p2, %p861_p1 }
  0x1f   : > { %p864_p4 = pnand %p863_p3, %p857_p0 }
  0x21   : > { %867 = shalt.err (!%p864_p4)
}
  0x22   : > { %784 = dma.hbm_to_vmem [thread:$0]  (!%p1104_p9), %s250_s12, 1024, %s253_s14, %s1115_s15  }
  0x23   : > { %p297_p5 = scmp.lt.s32.totalorder %s1010_s23, 3  ;;  %s1259_s0 = sld [smem:[#allocation14_spill]] }
  0x24   : > { %s223_s13 = scalar_lea.vmem [#allocation4], %s1102_s7  ;;  %s220_s17 = scalar_lea.sflag [#allocation5], %s1096_s30 }
  0x25   : > { %p1128_p6 = pnand %p757_p10, %p297_p5  ;;  %s232_s16 = sshll.u32 %s223_s13, 4  ;;  %s233_s16 = int_to_ptr.vmem [resolvable:$true] %s232_s16 }
  0x26   : > { %s881_s18 = scalar_lea.vmem %s233_s16, 1024  ;;  %s1013_s12 = smov [#allocation4]  }
  0x27   : > { %p882_p8 = scmp.ne.s32.totalorder %s233_s16, %s881_s18  ;;  %s886_s14 = sshll.u32 %s1013_s12, 4  ;;  %s887_s14 = int_to_ptr.vmem [resolvable:$false] %s886_s14 }
  0x28   : > { %s888_s26 = scalar_lea.vmem %s887_s14, 2048  ;;  %p889_p10 = scmp.lt.s32.totalorder %s233_s16, %s887_s14 }
  0x29   : > { %s230_s11 = scalar_lea.hbm %s1259_s0, %s1099_s6  ;;  %p884_p12 = pnand %p882_p8, %p842_p11 }
  0x2a   : > { %p890_p0 = scmp.lt.s32.totalorder %s888_s26, %s881_s18 }
  0x2b   : > { %p885_p13 = pneg %p884_p12 }
  0x2c   : > { %p891_p1 = por %p890_p0, %p889_p10 }
  0x2e   : > { %p892_p2 = pnand %p891_p1, %p885_p13 }
  0x30   : > { %895 = shalt.err (!%p892_p2)
}
  0x31   : > { %781 = dma.hbm_to_vmem [thread:$0]  (!%p1104_p9), %s230_s11, 1024, %s233_s16, %s220_s17  }
  0x32   : > { %s270_s13 = scalar_lea.hbm %s1250_s2, %s1099_s6  ;;  %s263_s24 = scalar_lea.vmem [#allocation8], %s1102_s7 }
  0x33   : > { %s272_s0 = sshll.u32 %s263_s24, 4  ;;  %s1014_s18 = smov [#allocation8]   ;;  %s273_s0 = int_to_ptr.vmem [resolvable:$true] %s272_s0 }
  0x34   : > { %s909_s12 = scalar_lea.vmem %s273_s0, 1024  ;;  %s914_s14 = sshll.u32 %s1014_s18, 4  ;;  %s915_s14 = int_to_ptr.vmem [resolvable:$false] %s914_s14 }
  0x35   : > { %p910_p3 = scmp.ne.s32.totalorder %s273_s0, %s909_s12  ;;  %s916_s26 = scalar_lea.vmem %s915_s14, 2048 }
  0x36   : > { %p917_p8 = scmp.lt.s32.totalorder %s273_s0, %s915_s14  ;;  %p918_p12 = scmp.lt.s32.totalorder %s916_s26, %s909_s12 }
  0x37   : > { %p912_p4 = pnand %p910_p3, %p842_p11 }
  0x38   : > { %p919_p13 = por %p918_p12, %p917_p8 }
  0x39   : > { %p913_p5 = pneg %p912_p4 }
  0x3b   : > { %p920_p10 = pnand %p919_p13, %p913_p5 }
  0x3d   : > { %923 = shalt.err (!%p920_p10)
}
  0x3e   : > { %787 = dma.hbm_to_vmem [thread:$0]  (!%p1104_p9), %s270_s13, 1024, %s273_s0, %s1115_s15  }
  0x3f   : > { %s290_s16 = scalar_lea.hbm %s1251_s3, %s1099_s6  ;;  %s283_s17 = scalar_lea.vmem [#allocation9], %s1102_s7 }
  0x40   : > { %s292_s9 = sshll.u32 %s283_s17, 4  ;;  %s280_s10 = scalar_lea.sflag [#allocation10], %s1096_s30  ;;  %s293_s9 = int_to_ptr.vmem [resolvable:$true] %s292_s9 }
  0x41   : > { %s937_s12 = scalar_lea.vmem %s293_s9, 1024  ;;  %s1015_s18 = smov [#allocation9]  }
  0x42   : > { %p938_p0 = scmp.ne.s32.totalorder %s293_s9, %s937_s12  ;;  %s942_s14 = sshll.u32 %s1015_s18, 4  ;;  %s943_s14 = int_to_ptr.vmem [resolvable:$false] %s942_s14 }
  0x43   : > { %s944_s26 = scalar_lea.vmem %s943_s14, 2048  ;;  %p945_p3 = scmp.lt.s32.totalorder %s293_s9, %s943_s14 }
  0x44   : > { %p940_p1 = pnand %p938_p0, %p842_p11  ;;  %p946_p4 = scmp.lt.s32.totalorder %s944_s26, %s937_s12 }
  0x46   : > { %p941_p2 = pneg %p940_p1  ;;  %p947_p5 = por %p946_p4, %p945_p3 }
  0x48   : > { %p948_p8 = pnand %p947_p5, %p941_p2 }
  0x4a   : > { %951 = shalt.err (!%p948_p8)
}
  0x4b   : > { %790 = dma.hbm_to_vmem [thread:$0]  (!%p1104_p9), %s290_s16, 1024, %s293_s9, %s280_s10  }
  0x4c   : > { %301 = sbr.rel (%p1128_p6) target bundleno = 254 (0xfe), region = 36  ;;  %s303_s0 = sand.u32 (!%p1128_p6), 1, %s994_s19  }
  0x4d   : > { %s758_s30 = sshll.u32 (!%p1128_p6), %s303_s0, 6  ;;  %s304_s6 = scalar_lea.sflag (!%p1128_p6), [#allocation5], %s303_s0 }
  0x4e   : > { %s1168_s7 = scalar_lea.vmem (!%p1128_p6), [#allocation4], %s758_s30 }
  0x51   : > { %977 = dma.done.wait (%p1087_p7), %s304_s6, 1024  }
  0x52   : > { %979 = vsyncadd (%p1087_p7), %s304_s6, 4294966272  ;;  %s1260_s15 = sadd.s32 4294967295, %s1010_s23   ;;  %s1176_s24 = scalar_lea.vmem [#allocation6], %s758_s30 }
  0x53   : > { %s312_s8 = sand.u32 1, %s1260_s15  }
  0x54   : > { %s313_s13 = scalar_lea.sflag [#allocation7], %s312_s8 }
  0x55   : > { %981 = dma.done.wait (%p1087_p7), %s313_s13, 2048  }
  0x56   : > { %983 = vsyncadd (%p1087_p7), %s313_s13, 4294965248  ;;  %s1182_s27 = scalar_lea.vmem [#allocation8], %s758_s30  ;;  %s331_s11 = scalar_lea.sflag [#allocation10], %s303_s0 }
  0x57   : > { %s1184_s16 = scalar_lea.vmem [#allocation9], %s758_s30 }
  0x58   : > { %985 = dma.done.wait (%p1087_p7), %s331_s11, 1024  }
  0x59   : > { %987 = vsyncadd (%p1087_p7), %s331_s11, 4294966272  ;;  %v415_v0 = vld [vmem:[%s1168_s7] sm:$0xff]  ;;  %v416_v1 = vld [vmem:[%s1168_s7 + $0x8] sm:$0xff]  ;;  %p387_p7 = scmp.lt.s32.totalorder %s1002_s21, 1  ;;  %vm547_vm0 = vcmask 7168  }
  0x5a   : > { %v417_v2 = vld [vmem:[%s1168_s7 + $0x10] sm:$0xff]  ;;  %v418_v3 = vld [vmem:[%s1168_s7 + $0x18] sm:$0xff]  ;;  %v419_v4 = vld [vmem:[%s1168_s7 + $0x20] sm:$0xff] }
  0x5b   : > { %v423_v5 = vld [vmem:[%s1182_s27] sm:$0xff]  ;;  %v424_v6 = vld [vmem:[%s1182_s27 + $0x8] sm:$0xff]  ;;  %v425_v7 = vld [vmem:[%s1182_s27 + $0x10] sm:$0xff]  ;;  %s1269_s21 = smov (!%p387_p7, %s1002_s21), 1 }
  0x5c   : > { %v426_v8 = vld [vmem:[%s1182_s27 + $0x18] sm:$0xff]  ;;  %v431_v9 = vsub.f32 %v415_v0, %v423_v5  ;;  %v427_v10 = vld [vmem:[%s1182_s27 + $0x20] sm:$0xff]  ;;  %v432_v11 = vsub.f32 %v416_v1, %v424_v6  ;;  %v433_v12 = vsub.f32 %v417_v2, %v425_v7  ;;  %v420_v14 = vld [vmem:[%s1168_s7 + $0x28] sm:$0xff]  ;;  %s762_s28 = sshll.u32 %s1269_s21, 3 }
  0x5d   : > { %v434_v13 = vsub.f32 %v418_v3, %v426_v8  ;;  %v421_v15 = vld [vmem:[%s1168_s7 + $0x30] sm:$0xff]  ;;  %v428_v16 = vld [vmem:[%s1182_s27 + $0x28] sm:$0xff]  ;;  %v435_v18 = vsub.f32 %v419_v4, %v427_v10  ;;  %v439_v21 = vld [vmem:[%s1176_s24] sm:$0xff]  ;;  %s390_s10 = scalar_lea.vmem %s1252_s4, %s762_s28  ;;  %s394_s14 = scalar_lea.vmem %s1253_s5, %s762_s28 }
  0x5e   : > { %v471_v17 = vmul.f32 %v431_v9, %v431_v9  ;;  %v472_v19 = vmul.f32 %v432_v11, %v432_v11  ;;  %v473_v20 = vmul.f32 %v433_v12, %v433_v12  ;;  %v440_v22 = vld [vmem:[%s1176_s24 + $0x8] sm:$0xff]  ;;  %v441_v23 = vld [vmem:[%s1176_s24 + $0x10] sm:$0xff]  ;;  %v422_v24 = vld [vmem:[%s1168_s7 + $0x38] sm:$0xff]  ;;  %v436_v28 = vsub.f32 %v420_v14, %v428_v16 }
  0x5f   : > { %v429_v25 = vld [vmem:[%s1182_s27 + $0x30] sm:$0xff]  ;;  %v442_v26 = vld [vmem:[%s1176_s24 + $0x18] sm:$0xff]  ;;  %v443_v27 = vld [vmem:[%s1176_s24 + $0x20] sm:$0xff]  ;;  %v474_v29 = vmul.f32 %v434_v13, %v434_v13  ;;  %v475_v41 = vmul.f32 %v435_v18, %v435_v18 }
  0x60   : > { %v538_v30 = vadd.f32 %v472_v19, %v471_v17  ;;  %v447_v31 = vld [vmem:[%s1184_s16] sm:$0xff]  ;;  %v448_v32 = vld [vmem:[%s1184_s16 + $0x8] sm:$0xff]  ;;  %v449_v33 = vld [vmem:[%s1184_s16 + $0x10] sm:$0xff]  ;;  %v437_v40 = vsub.f32 %v421_v15, %v429_v25  ;;  %v476_v50 = vmul.f32 %v436_v28, %v436_v28 }
  0x61   : > { %v430_v34 = vld [vmem:[%s1182_s27 + $0x38] sm:$0xff]  ;;  %v451_v36 = vld [vmem:[%s1184_s16 + $0x20] sm:$0xff]  ;;  %v455_v37 = vsub.f32 %v439_v21, %v447_v31  ;;  %v456_v38 = vsub.f32 %v440_v22, %v448_v32  ;;  %v457_v39 = vsub.f32 %v441_v23, %v449_v33  ;;  %v444_v43 = vld [vmem:[%s1176_s24 + $0x28] sm:$0xff] }
  0x62   : > { %v450_v35 = vld [vmem:[%s1184_s16 + $0x18] sm:$0xff]  ;;  %v539_v42 = vadd.f32 %v538_v30, %v473_v20  ;;  %v452_v44 = vld [vmem:[%s1184_s16 + $0x28] sm:$0xff]  ;;  %v459_v46 = vsub.f32 %v443_v27, %v451_v36  ;;  %v438_v49 = vsub.f32 %v422_v24, %v430_v34  ;;  %v445_v52 = vld [vmem:[%s1176_s24 + $0x30] sm:$0xff]  ;;  %v477_v58 = vmul.f32 %v437_v40, %v437_v40 }
  0x63   : > { %v458_v45 = vsub.f32 %v442_v26, %v450_v35  ;;  %v503_v47 = vmul.f32 %v455_v37, %v455_v37  ;;  %v504_v48 = vmul.f32 %v456_v38, %v456_v38  ;;  %v453_v53 = vld [vmem:[%s1184_s16 + $0x30] sm:$0xff]  ;;  %v505_v54 = vmul.f32 %v457_v39, %v457_v39  ;;  %v446_v60 = vld [vmem:[%s1176_s24 + $0x38] sm:$0xff] }
  0x64   : > { %v540_v51 = vadd.f32 %v539_v42, %v474_v29  ;;  %v460_v55 = vsub.f32 %v444_v43, %v452_v44  ;;  %v454_v61 = vld [vmem:[%s1184_s16 + $0x38] sm:$0xff]  ;;  %v461_v62 = vsub.f32 %v445_v52, %v453_v53  ;;  %v507_v63 = vmul.f32 %v459_v46, %v459_v46 }
  0x65   : > { %v506_v56 = vmul.f32 %v458_v45, %v458_v45  ;;  %v557_v57 = vadd.f32 %v504_v48, %v503_v47  ;;  %v478_v1 = vmul.f32 %v438_v49, %v438_v49  ;;  %v462_v3 = vsub.f32 %v446_v60, %v454_v61 }
  0x66   : > { %v541_v59 = vadd.f32 %v540_v51, %v475_v41  ;;  %v508_v4 = vmul.f32 %v460_v55, %v460_v55  ;;  %v509_v7 = vmul.f32 %v461_v62, %v461_v62 }
  0x67   : > { %v558_v0 = vadd.f32 %v557_v57, %v505_v54  ;;  %v510_v10 = vmul.f32 %v462_v3, %v462_v3 }
  0x68   : > { %v542_v2 = vadd.f32 %v541_v59, %v476_v50 }
  0x69   : > { %v559_v5 = vadd.f32 %v558_v0, %v506_v56 }
  0x6a   : > { %v543_v6 = vadd.f32 %v542_v2, %v477_v58 }
  0x6b   : > { %v560_v8 = vadd.f32 %v559_v5, %v507_v63 }
  0x6c   : > { %v544_v9 = vadd.f32 %v543_v6, %v478_v1 }
  0x6d   : > { %v561_v11 = vadd.f32 %v560_v8, %v508_v4 }
  0x6e   : > { %545 = vadd.xlane.f32.xlu0 %v544_v9 }
  0x6f   : > { %v562_v12 = vadd.f32 %v561_v11, %v509_v7 }
  0x71   : > { %v563_v13 = vadd.f32 %v562_v12, %v510_v10 }
  0x73   : > { %564 = vadd.xlane.f32.xlu0 %v563_v13 }
  0xf7   : > { %v546_v14 = vpop.xlane.xlu0 %545 }
  0xf8   : > { %548 = vst.msk [vmem:[%s390_s10] sm:$0xff] %vm547_vm0, %v546_v14 }
  0xfc   : > { %v565_v15 = vpop.xlane.xlu0 %564 }
  0xfd   : > { %566 = vst.msk [vmem:[%s394_s14] sm:$0xff] %vm547_vm0, %v565_v15 }
  0xfe PF: > { %s25_s23 = sadd.s32 1, %s1010_s23   ;;  %s1261_s18 = smov %s994_s19 }
  0xff   : > { %p22_p9 = scmp.ge.s32.totalorder %s25_s23, 4   ;;  %s1262_s19 = smov %s998_s20 }
 0x100   : > { %s1263_s20 = smov %s1093_s29  ;;  %s1264_s21 = smov %s1006_s22 }
 0x101   : > { %s1265_s22 = smov %s1267_s25  ;;  %24 = sbr.rel (!%p22_p9) target bundleno = 10 (0xa), region = 133 }
 0x106   :  { %600 = vsyncpa [#allocation5], 1 }
 0x107   :  { %602 = vsyncpa [#allocation5 + $0x1], 1 }
 0x108   :  { %603 = vsyncpa [#allocation7], 1 }
 0x109   :  { %605 = vsyncpa [#allocation7 + $0x1], 1 }
 0x10a   :  { %606 = vsyncpa [#allocation10], 1 }
 0x10b   :  { %608 = vsyncpa [#allocation10 + $0x1], 1 }

</bundles_post_ra>
